<compile_context>
chip_gen: v7x
topology: tpu7x:2x2x1
jax: 0.10.0
libtpu: 0.0.40
codegen_flags: <defaults>
</compile_context>

<pallas_src>
import jax
import jax.numpy as jnp
from jax.experimental import pallas as pl
from jax.experimental.pallas import tpu as pltpu


def _count_layer_kernel(x_ref, w1_ref, b1_ref, w2_ref, b2_ref, o_ref):
    """Fused conv1x1(+ReLU) x2, 2x2 avg/max pool, concat-conv1x1(+ReLU)."""
    P = x_ref.shape[0]            # pool*pool window taps (=4)
    tp = x_ref.shape[1]           # pooled pixels in this tile
    C2 = w1_ref.shape[1]          # 2 * inplanes (fused [Wa | Wm] output width)
    Ch = C2 // 2                  # width of each first-conv branch

    w1 = w1_ref[...]
    b1 = b1_ref[...]

    # First 1x1 conv (+ bias + ReLU) on each window tap, pooling on the fly:
    # sum (-> avg) for the avg branch, running max for the max branch.
    s = None
    m = None
    for t in range(P):            # P is static; unrolled at trace time
        y = jnp.maximum(
            jnp.dot(x_ref[t], w1, preferred_element_type=jnp.float32) + b1, 0.0)
        s = y if s is None else s + y
        m = y if m is None else jnp.maximum(m, y)

    # First Ch lanes come from the avg-pool branch, last Ch from the max branch.
    lane = jax.lax.broadcasted_iota(jnp.int32, (tp, C2), 1)
    pooled = jnp.where(lane < Ch, s * (1.0 / P), m)

    # Fused concat + 1x1 conv + ReLU:  concat([avg, max], C) @ W2  ==  pooled @ W2.
    z = jnp.dot(pooled.astype(w2_ref.dtype), w2_ref[...],
                preferred_element_type=jnp.float32)
    o_ref[...] = jnp.maximum(z + b2_ref[...], 0.0).astype(o_ref.dtype)


def _round_up(x, m):
    return (x + m - 1) // m * m


def count_layer_forward(x_nchw, params, pool=2, tile_p=512, compute_dtype=None):
    """Count_layer forward.  x_nchw: (N, C, H, W) -> (N, C, H//2, W//2)."""
    assert pool == 2, "kernel hard-codes a 2x2 pooling window"
    wa, ba, wm, bm, w2, b2 = params   # weights (Cin, Cout); biases (1, Cout)
    N, C, H, W = x_nchw.shape
    assert H % pool == 0 and W % pool == 0
    Ho, Wo = H // pool, W // pool
    Np = N * Ho * Wo
    P = pool * pool
    C2 = 2 * C
    Co = w2.shape[1]

    cd = jnp.dtype(compute_dtype) if compute_dtype is not None else x_nchw.dtype
    out_dtype = x_nchw.dtype

    # Fuse NCHW->channels-last with the 2x2 window-major layout in ONE XLA pass:
    # (N, C, H, W) -> (pool*pool, N*Ho*Wo, C)
    xw = x_nchw.reshape(N, C, Ho, pool, Wo, pool)
    xw = jnp.transpose(xw, (3, 5, 0, 2, 4, 1)).reshape(P, Np, C).astype(cd)

    # Fold the two first-layer convs into one wide weight (single MXU stream).
    w1 = jnp.concatenate([wa, wm], axis=1).astype(cd)            # (C, 2C)
    b1 = jnp.concatenate([ba, bm], axis=1).astype(jnp.float32)   # (1, 2C)
    w2c = w2.astype(cd)                                          # (2C, Co)
    b2c = b2.astype(jnp.float32)                                 # (1, Co)

    # Tile over pooled pixels; pad so arbitrary (N, H, W) work (no divisibility
    # asserts).  Default tile_p=512 keeps the (4, tp, C) f32 block v7x-safe.
    tp = _round_up(min(tile_p, _round_up(Np, 8)), 8)
    Np_pad = _round_up(Np, tp)
    if Np_pad != Np:
        xw = jnp.pad(xw, ((0, 0), (0, Np_pad - Np), (0, 0)))
    grid = (Np_pad // tp,)

    # Explicit scoped-VMEM budget: double-buffered in/out blocks + weights.
    isz = jnp.dtype(cd).itemsize
    osz = jnp.dtype(out_dtype).itemsize
    in_blk = P * tp * C * isz
    out_blk = tp * Co * osz
    w_bytes = (C * C2 + C2 * Co) * isz + (C2 + Co) * 4
    vmem_limit = int(2 * (in_blk + out_blk) + 2 * w_bytes + (4 << 20))
    vmem_limit = max(vmem_limit, 32 << 20)

    cost = pl.CostEstimate(
        flops=int(Np_pad * (P * 2 * C * C2 + 2 * C2 * Co)),
        transcendentals=0,
        bytes_accessed=int(P * Np_pad * C * isz
                           + (C * C2 + C2 * Co) * isz + (C2 + Co) * 4
                           + Np_pad * Co * osz),
    )

    out = pl.pallas_call(
        _count_layer_kernel,
        out_shape=jax.ShapeDtypeStruct((Np_pad, Co), out_dtype),
        grid_spec=pltpu.PrefetchScalarGridSpec(
            num_scalar_prefetch=0,
            grid=grid,
            in_specs=[
                pl.BlockSpec((P, tp, C), lambda i: (0, i, 0)),
                pl.BlockSpec((C, C2), lambda i: (0, 0)),
                pl.BlockSpec((1, C2), lambda i: (0, 0)),
                pl.BlockSpec((C2, Co), lambda i: (0, 0)),
                pl.BlockSpec((1, Co), lambda i: (0, 0)),
            ],
            out_specs=pl.BlockSpec((tp, Co), lambda i: (i, 0)),
        ),
        compiler_params=pltpu.CompilerParams(
            dimension_semantics=("parallel",),
            vmem_limit_bytes=vmem_limit,
        ),
        cost_estimate=cost,
    )(xw, w1, b1, w2c, b2c)

    # (Np, Co) -> (N, Ho, Wo, Co) -> NCHW to match the PyTorch interface.
    # TODO(synk): keep the surrounding model channels-last to drop this transpose.
    out = out[:Np].reshape(N, Ho, Wo, Co)
    return jnp.transpose(out, (0, 3, 1, 2))


def _reference_forward(x_nchw, params, pool=2):
    """Pure-JAX reference mirroring the PyTorch module (for validation)."""
    wa, ba, wm, bm, w2, b2 = params
    N, C, H, W = x_nchw.shape
    x = jnp.transpose(x_nchw, (0, 2, 3, 1))  # NHWC
    ya = jnp.maximum(x @ wa + ba[0], 0.0)
    ym = jnp.maximum(x @ wm + bm[0], 0.0)
    ya = ya.reshape(N, H // pool, pool, W // pool, pool, C).mean(axis=(2, 4))
    ym = ym.reshape(N, H // pool, pool, W // pool, pool, C).max(axis=(2, 4))
    z = jnp.maximum(jnp.concatenate([ya, ym], axis=-1) @ w2 + b2[0], 0.0)
    return jnp.transpose(z, (0, 3, 1, 2))


def init_params(key, inplanes):
    """Deterministic synthetic parameters (not a checkpoint load).
    Weights stored as (Cin, Cout) == transposed PyTorch conv1x1 weight."""
    k = jax.random.split(key, 6)
    s = 1.0 / jnp.sqrt(inplanes)
    wa = jax.random.uniform(k[0], (inplanes, inplanes), jnp.float32, -s, s)
    ba = jax.random.uniform(k[1], (1, inplanes), jnp.float32, -s, s)
    wm = jax.random.uniform(k[2], (inplanes, inplanes), jnp.float32, -s, s)
    bm = jax.random.uniform(k[3], (1, inplanes), jnp.float32, -s, s)
    s2 = 1.0 / jnp.sqrt(2 * inplanes)
    w2 = jax.random.uniform(k[4], (2 * inplanes, inplanes), jnp.float32, -s2, s2)
    b2 = jax.random.uniform(k[5], (1, inplanes), jnp.float32, -s2, s2)
    return wa, ba, wm, bm, w2, b2


if __name__ == "__main__":
    key = jax.random.PRNGKey(0)
    kx, kp = jax.random.split(key)

    N, C, H, W = 2, 4, 16, 16          # small demo shapes; module default inplanes=512, pool=2
    x = jax.random.normal(kx, (N, C, H, W), dtype=jnp.float32)
    params = init_params(kp, C)

    out = count_layer_forward(x, params, pool=2)
    out = jax.block_until_ready(out)

    ref = _reference_forward(x, params, pool=2)
    assert out.shape == (N, C, H // 2, W // 2), out.shape
    assert jnp.allclose(out, ref, atol=1e-5, rtol=1e-5), "mismatch vs reference"

    print("KERNEL_OK")
</pallas_src>

<mosaic_0001>
module attributes {stable_mosaic.version = 11 : i64} {
  func.func @_count_layer_kernel(%arg0: i32, %arg1: memref<4x128x4xf32, #tpu.memory_space<vmem>>, %arg2: memref<4x8xf32, #tpu.memory_space<vmem>>, %arg3: memref<1x8xf32, #tpu.memory_space<vmem>>, %arg4: memref<8x4xf32, #tpu.memory_space<vmem>>, %arg5: memref<1x4xf32, #tpu.memory_space<vmem>>, %arg6: memref<128x4xf32, #tpu.memory_space<vmem>>) attributes {dimension_semantics = [#tpu.dimension_semantics<parallel>], iteration_bounds = array<i64: 1>, scalar_prefetch = 0 : i64, scratch_operands = 0 : i64, tpu.core_type = #tpu.core_type<tc>, window_params = [{transform_indices = @transform_0, window_bounds = array<i64: 4, 128, 4>}, {pipeline_mode = #tpu.pipeline_mode<synchronous>, transform_indices = @transform_1, window_bounds = array<i64: 4, 8>}, {pipeline_mode = #tpu.pipeline_mode<synchronous>, transform_indices = @transform_2, window_bounds = array<i64: 1, 8>}, {pipeline_mode = #tpu.pipeline_mode<synchronous>, transform_indices = @transform_3, window_bounds = array<i64: 8, 4>}, {pipeline_mode = #tpu.pipeline_mode<synchronous>, transform_indices = @transform_4, window_bounds = array<i64: 1, 4>}, {transform_indices = @transform_5, window_bounds = array<i64: 128, 4>}]} {
    %c0 = arith.constant 0 : index
    %c0_0 = arith.constant 0 : index
    %0 = vector.load %arg2[%c0, %c0_0] : memref<4x8xf32, #tpu.memory_space<vmem>>, vector<4x8xf32>
    %c0_1 = arith.constant 0 : index
    %c0_2 = arith.constant 0 : index
    %1 = vector.load %arg3[%c0_1, %c0_2] : memref<1x8xf32, #tpu.memory_space<vmem>>, vector<1x8xf32>
    %c0_3 = arith.constant 0 : index
    %c0_4 = arith.constant 0 : index
    %c0_5 = arith.constant 0 : index
    %2 = vector.load %arg1[%c0_3, %c0_4, %c0_5] : memref<4x128x4xf32, #tpu.memory_space<vmem>>, vector<1x128x4xf32>
    %3 = vector.shape_cast %2 : vector<1x128x4xf32> to vector<128x4xf32>
    %cst = arith.constant dense<0.000000e+00> : vector<128x8xf32>
    %4 = tpu.matmul %3, %0, %cst {dimension_numbers = #tpu.dot_dimension_numbers<[1], [0], [0], [1], [0, 0, 1, 1], [], []>} : vector<128x4xf32>, vector<4x8xf32>, vector<128x8xf32> -> vector<128x8xf32>
    %5 = vector.broadcast %1 : vector<1x8xf32> to vector<128x8xf32>
    %6 = arith.addf %4, %5 : vector<128x8xf32>
    %cst_6 = arith.constant 0.000000e+00 : f32
    %7 = vector.broadcast %cst_6 : f32 to vector<128x8xf32>
    %8 = arith.maximumf %6, %7 : vector<128x8xf32>
    %c1 = arith.constant 1 : index
    %c0_7 = arith.constant 0 : index
    %c0_8 = arith.constant 0 : index
    %9 = vector.load %arg1[%c1, %c0_7, %c0_8] : memref<4x128x4xf32, #tpu.memory_space<vmem>>, vector<1x128x4xf32>
    %10 = vector.shape_cast %9 : vector<1x128x4xf32> to vector<128x4xf32>
    %cst_9 = arith.constant dense<0.000000e+00> : vector<128x8xf32>
    %11 = tpu.matmul %10, %0, %cst_9 {dimension_numbers = #tpu.dot_dimension_numbers<[1], [0], [0], [1], [0, 0, 1, 1], [], []>} : vector<128x4xf32>, vector<4x8xf32>, vector<128x8xf32> -> vector<128x8xf32>
    %12 = vector.broadcast %1 : vector<1x8xf32> to vector<128x8xf32>
    %13 = arith.addf %11, %12 : vector<128x8xf32>
    %cst_10 = arith.constant 0.000000e+00 : f32
    %14 = vector.broadcast %cst_10 : f32 to vector<128x8xf32>
    %15 = arith.maximumf %13, %14 : vector<128x8xf32>
    %16 = arith.addf %8, %15 : vector<128x8xf32>
    %17 = arith.maximumf %8, %15 : vector<128x8xf32>
    %c2 = arith.constant 2 : index
    %c0_11 = arith.constant 0 : index
    %c0_12 = arith.constant 0 : index
    %18 = vector.load %arg1[%c2, %c0_11, %c0_12] : memref<4x128x4xf32, #tpu.memory_space<vmem>>, vector<1x128x4xf32>
    %19 = vector.shape_cast %18 : vector<1x128x4xf32> to vector<128x4xf32>
    %cst_13 = arith.constant dense<0.000000e+00> : vector<128x8xf32>
    %20 = tpu.matmul %19, %0, %cst_13 {dimension_numbers = #tpu.dot_dimension_numbers<[1], [0], [0], [1], [0, 0, 1, 1], [], []>} : vector<128x4xf32>, vector<4x8xf32>, vector<128x8xf32> -> vector<128x8xf32>
    %21 = vector.broadcast %1 : vector<1x8xf32> to vector<128x8xf32>
    %22 = arith.addf %20, %21 : vector<128x8xf32>
    %cst_14 = arith.constant 0.000000e+00 : f32
    %23 = vector.broadcast %cst_14 : f32 to vector<128x8xf32>
    %24 = arith.maximumf %22, %23 : vector<128x8xf32>
    %25 = arith.addf %16, %24 : vector<128x8xf32>
    %26 = arith.maximumf %17, %24 : vector<128x8xf32>
    %c3 = arith.constant 3 : index
    %c0_15 = arith.constant 0 : index
    %c0_16 = arith.constant 0 : index
    %27 = vector.load %arg1[%c3, %c0_15, %c0_16] : memref<4x128x4xf32, #tpu.memory_space<vmem>>, vector<1x128x4xf32>
    %28 = vector.shape_cast %27 : vector<1x128x4xf32> to vector<128x4xf32>
    %cst_17 = arith.constant dense<0.000000e+00> : vector<128x8xf32>
    %29 = tpu.matmul %28, %0, %cst_17 {dimension_numbers = #tpu.dot_dimension_numbers<[1], [0], [0], [1], [0, 0, 1, 1], [], []>} : vector<128x4xf32>, vector<4x8xf32>, vector<128x8xf32> -> vector<128x8xf32>
    %30 = vector.broadcast %1 : vector<1x8xf32> to vector<128x8xf32>
    %31 = arith.addf %29, %30 : vector<128x8xf32>
    %cst_18 = arith.constant 0.000000e+00 : f32
    %32 = vector.broadcast %cst_18 : f32 to vector<128x8xf32>
    %33 = arith.maximumf %31, %32 : vector<128x8xf32>
    %34 = arith.addf %25, %33 : vector<128x8xf32>
    %35 = arith.maximumf %26, %33 : vector<128x8xf32>
    %36 = tpu.iota {dimensions = array<i32: 1>} : vector<128x8xi32>
    %c4_i32 = arith.constant 4 : i32
    %37 = vector.broadcast %c4_i32 : i32 to vector<128x8xi32>
    %38 = arith.cmpi slt, %36, %37 : vector<128x8xi32>
    %cst_19 = arith.constant 2.500000e-01 : f32
    %39 = vector.broadcast %cst_19 : f32 to vector<128x8xf32>
    %40 = arith.mulf %34, %39 : vector<128x8xf32>
    %41 = arith.select %38, %40, %35 : vector<128x8xi1>, vector<128x8xf32>
    %c0_20 = arith.constant 0 : index
    %c0_21 = arith.constant 0 : index
    %42 = vector.load %arg4[%c0_20, %c0_21] : memref<8x4xf32, #tpu.memory_space<vmem>>, vector<8x4xf32>
    %cst_22 = arith.constant dense<0.000000e+00> : vector<128x4xf32>
    %43 = tpu.matmul %41, %42, %cst_22 {dimension_numbers = #tpu.dot_dimension_numbers<[1], [0], [0], [1], [0, 0, 1, 1], [], []>} : vector<128x8xf32>, vector<8x4xf32>, vector<128x4xf32> -> vector<128x4xf32>
    %c0_23 = arith.constant 0 : index
    %c0_24 = arith.constant 0 : index
    %44 = vector.load %arg5[%c0_23, %c0_24] : memref<1x4xf32, #tpu.memory_space<vmem>>, vector<1x4xf32>
    %45 = vector.broadcast %44 : vector<1x4xf32> to vector<128x4xf32>
    %46 = arith.addf %43, %45 : vector<128x4xf32>
    %cst_25 = arith.constant 0.000000e+00 : f32
    %47 = vector.broadcast %cst_25 : f32 to vector<128x4xf32>
    %48 = arith.maximumf %46, %47 : vector<128x4xf32>
    %c0_26 = arith.constant 0 : index
    %c0_27 = arith.constant 0 : index
    %49 = vector.load %arg6[%c0_26, %c0_27] : memref<128x4xf32, #tpu.memory_space<vmem>>, vector<128x4xf32>
    tpu.vector_store %arg6[%c0_26, %c0_27], %48 {strides = array<i32>} : memref<128x4xf32, #tpu.memory_space<vmem>>, vector<128x4xf32>,
    return
  }
  func.func @transform_0(%arg0: i32) -> (i32, i32, i32) {
    %c0_i32 = arith.constant 0 : i32
    %c0_i32_0 = arith.constant 0 : i32
    %c0_i32_1 = arith.constant 0 : i32
    return %c0_i32, %arg0, %c0_i32_0 : i32, i32, i32
  }
  func.func @transform_1(%arg0: i32) -> (i32, i32) {
    %c0_i32 = arith.constant 0 : i32
    %c0_i32_0 = arith.constant 0 : i32
    %c0_i32_1 = arith.constant 0 : i32
    return %c0_i32, %c0_i32_0 : i32, i32
  }
  func.func @transform_2(%arg0: i32) -> (i32, i32) {
    %c0_i32 = arith.constant 0 : i32
    %c0_i32_0 = arith.constant 0 : i32
    %c0_i32_1 = arith.constant 0 : i32
    return %c0_i32, %c0_i32_0 : i32, i32
  }
  func.func @transform_3(%arg0: i32) -> (i32, i32) {
    %c0_i32 = arith.constant 0 : i32
    %c0_i32_0 = arith.constant 0 : i32
    %c0_i32_1 = arith.constant 0 : i32
    return %c0_i32, %c0_i32_0 : i32, i32
  }
  func.func @transform_4(%arg0: i32) -> (i32, i32) {
    %c0_i32 = arith.constant 0 : i32
    %c0_i32_0 = arith.constant 0 : i32
    %c0_i32_1 = arith.constant 0 : i32
    return %c0_i32, %c0_i32_0 : i32, i32
  }
  func.func @transform_5(%arg0: i32) -> (i32, i32) {
    %c0_i32 = arith.constant 0 : i32
    %c0_i32_0 = arith.constant 0 : i32
    return %arg0, %c0_i32 : i32, i32
  }
}

</mosaic_0001>

<bundles_post_ra>
// kernel: tpu_custom_call.1
= control target key start
LH: loop header
LB: loop body
LE: loop exit
PB: predicated region body
PF: predicated region fallthrough
CT: control target
= control target key end

     0   :  { %vm93_vm0 = vcmask 1043456   ;;  %vm44_vm1 = vcmask 31744   ;;  %vm1075_vm3 = vcmask 64512   ;;  %s2320_s1 = inlined_call_operand.vmem [shape: f32[4,8], index: 1, kind: input, shape index: {}]   ;;  %s2321_s0 = inlined_call_operand.vmem [shape: f32[4,128,4], index: 0, kind: input, shape index: {}]   ;;  %s2322_s3 = inlined_call_operand.vmem [shape: f32[8,4], index: 3, kind: input, shape index: {}]   ;;  %s2323_s2 = inlined_call_operand.vmem [shape: f32[1,8], index: 2, kind: input, shape index: {}]   ;;  %s2324_s4 = inlined_call_operand.vmem [shape: f32[1,4], index: 4, kind: input, shape index: {}]   ;;  %s2325_s5 = inlined_call_operand.vmem [shape: f32[128,4], index: 5, kind: output, shape index: {}]  }
   0x1   :  { %v20_v0 = vld [vmem:[%s2320_s1] sm:$0xf]  ;;  %v31_v2 = vld [vmem:[%s2321_s0 + $0x48] sm:$0xff]  ;;  %v32_v5 = vld [vmem:[%s2321_s0 + $0x50] sm:$0xff] }
   0x2   :  { %v30_v1 = vld [vmem:[%s2321_s0 + $0x40] sm:$0xff]  ;;  %1654 = vmatprep.subr.msk.mxu1 %vm93_vm0, %v20_v0  ;;  %1524 = vmatprep.subr.msk.mxu0 %vm93_vm0, %v20_v0  ;;  %v23_v4 = vld [vmem:[%s2321_s0 + $0x8] sm:$0xff]  ;;  %v24_v6 = vld [vmem:[%s2321_s0 + $0x10] sm:$0xff] }
   0x3   :  { %1538 = vmatprep.mubr.msk.f32.mxu1 %vm44_vm1, %v30_v1  ;;  %v22_v3 = vld [vmem:[%s2321_s0] sm:$0xff]  ;;  %1655 = vmatpush3.msk.msra.mxu1 %vm93_vm0, %v20_v0  ;;  %v33_v7 = vld [vmem:[%s2321_s0 + $0x58] sm:$0xff]  ;;  %v35_v11 = vld [vmem:[%s2321_s0 + $0x68] sm:$0xff] }
   0x4   :  { %1539 = vmatmul.mubr.msk.f32.vlgmr.msra.gmra.mrb[0].mxu1 %vm44_vm1, %v31_v2  ;;  %1550 = vmatprep.subr.msk.mxu1 %vm93_vm0, %v20_v0  ;;  %v34_v8 = vld [vmem:[%s2321_s0 + $0x60] sm:$0xff]  ;;  %v25_v9 = vld [vmem:[%s2321_s0 + $0x18] sm:$0xff]  ;;  %v36_v12 = vld [vmem:[%s2321_s0 + $0x70] sm:$0xff] }
   0x5   :  { %1525 = vmatpush3.msk.msra.mxu0 %vm93_vm0, %v20_v0  ;;  %1526 = vmatprep.mubr.msk.f32.mxu0 %vm44_vm1, %v22_v3  ;;  %v26_v10 = vld [vmem:[%s2321_s0 + $0x20] sm:$0xff]  ;;  %v27_v13 = vld [vmem:[%s2321_s0 + $0x28] sm:$0xff]  ;;  %v28_v14 = vld [vmem:[%s2321_s0 + $0x30] sm:$0xff] }
   0x6   :  { %1551 = vmatpush3.msk.msra.mxu1 %vm93_vm0, %v20_v0  ;;  %1527 = vmatmul.mubr.msk.f32.vlgmr.msra.gmra.mrb[0].mxu0 %vm44_vm1, %v23_v4  ;;  %v37_v15 = vld [vmem:[%s2321_s0 + $0x78] sm:$0xff]  ;;  %v1323_v16 = vld [vmem:[%s2321_s0 + $0x80] sm:$0xff]  ;;  %v1324_v19 = vld [vmem:[%s2321_s0 + $0x88] sm:$0xff] }
   0x7   :  { %1541 = vmatprep.mubr.msk.f32.mxu1 %vm44_vm1, %v32_v5  ;;  %1529 = vmatprep.mubr.msk.f32.mxu0 %vm44_vm1, %v24_v6  ;;  %v29_v17 = vld [vmem:[%s2321_s0 + $0x38] sm:$0xff]  ;;  %v1356_v18 = vld [vmem:[%s2321_s0 + $0x100] sm:$0xff]  ;;  %v1325_v20 = vld [vmem:[%s2321_s0 + $0x90] sm:$0xff] }
   0x8   :  { %1542 = vmatmul.mubr.msk.f32.gmra.mrb[2].mxu1 %vm44_vm1, %v33_v7  ;;  %1576 = vmatprep.subr.msk.mxu0 %vm93_vm0, %v20_v0  ;;  %v1357_v21 = vld [vmem:[%s2321_s0 + $0x108] sm:$0xff]  ;;  %v1358_v22 = vld [vmem:[%s2321_s0 + $0x110] sm:$0xff]  ;;  %v1326_v23 = vld [vmem:[%s2321_s0 + $0x98] sm:$0xff] }
   0x9   :  { %1544 = vmatprep.mubr.msk.f32.mxu1 %vm44_vm1, %v34_v8  ;;  %1602 = vmatprep.subr.msk.mxu1 %vm93_vm0, %v20_v0  ;;  %v1327_v24 = vld [vmem:[%s2321_s0 + $0xa0] sm:$0xff]  ;;  %v1359_v25 = vld [vmem:[%s2321_s0 + $0x118] sm:$0xff]  ;;  %v1328_v27 = vld [vmem:[%s2321_s0 + $0xa8] sm:$0xff] }
   0xa   :  { %1530 = vmatmul.mubr.msk.f32.gmra.mrb[2].mxu0 %vm44_vm1, %v25_v9  ;;  %v1360_v26 = vld [vmem:[%s2321_s0 + $0x120] sm:$0xff]  ;;  %v1329_v28 = vld [vmem:[%s2321_s0 + $0xb0] sm:$0xff]  ;;  %v1361_v29 = vld [vmem:[%s2321_s0 + $0x128] sm:$0xff] }
   0xb   :  { %1532 = vmatprep.mubr.msk.f32.mxu0 %vm44_vm1, %v26_v10  ;;  %1577 = vmatpush3.msk.msra.mxu0 %vm93_vm0, %v20_v0  ;;  %v1362_v30 = vld [vmem:[%s2321_s0 + $0x130] sm:$0xff]  ;;  %v1330_v31 = vld [vmem:[%s2321_s0 + $0xb8] sm:$0xff]  ;;  %v1331_v32 = vld [vmem:[%s2321_s0 + $0xc0] sm:$0xff] }
   0xc   :  { %1545 = vmatmul.mubr.msk.f32.gmra.mrb[4].mxu1 %vm44_vm1, %v35_v11  ;;  %v1363_v33 = vld [vmem:[%s2321_s0 + $0x138] sm:$0xff]  ;;  %v1364_v34 = vld [vmem:[%s2321_s0 + $0x140] sm:$0xff]  ;;  %v1332_v35 = vld [vmem:[%s2321_s0 + $0xc8] sm:$0xff] }
   0xd   :  { %1547 = vmatprep.mubr.msk.f32.mxu1 %vm44_vm1, %v36_v12  ;;  %v1333_v36 = vld [vmem:[%s2321_s0 + $0xd0] sm:$0xff]  ;;  %v1365_v37 = vld [vmem:[%s2321_s0 + $0x148] sm:$0xff]  ;;  %v1334_v39 = vld [vmem:[%s2321_s0 + $0xd8] sm:$0xff]  ;;  %v1032_v12 = vlaneseq }
   0xe   :  { %1533 = vmatmul.mubr.msk.f32.gmra.mrb[4].mxu0 %vm44_vm1, %v27_v13  ;;  %v1366_v38 = vld [vmem:[%s2321_s0 + $0x150] sm:$0xff]  ;;  %v1335_v40 = vld [vmem:[%s2321_s0 + $0xe0] sm:$0xff]  ;;  %v1367_v41 = vld [vmem:[%s2321_s0 + $0x158] sm:$0xff] }
   0xf   :  { %1535 = vmatprep.mubr.msk.f32.mxu0 %vm44_vm1, %v28_v14  ;;  %v1368_v42 = vld [vmem:[%s2321_s0 + $0x160] sm:$0xff]  ;;  %v1336_v43 = vld [vmem:[%s2321_s0 + $0xe8] sm:$0xff]  ;;  %v1337_v44 = vld [vmem:[%s2321_s0 + $0xf0] sm:$0xff] }
  0x10   :  { %1548 = vmatmul.mubr.msk.f32.gmra.mrb[6].mxu1 %vm44_vm1, %v37_v15  ;;  %v1369_v45 = vld [vmem:[%s2321_s0 + $0x168] sm:$0xff]  ;;  %v1370_v46 = vld [vmem:[%s2321_s0 + $0x170] sm:$0xff]  ;;  %v1338_v47 = vld [vmem:[%s2321_s0 + $0xf8] sm:$0xff] }
  0x11   :  { %1552 = vmatprep.mubr.msk.f32.mxu1 %vm44_vm1, %v1323_v16  ;;  %v1389_v48 = vld [vmem:[%s2321_s0 + $0x180] sm:$0xff]  ;;  %v1371_v49 = vld [vmem:[%s2321_s0 + $0x178] sm:$0xff]  ;;  %v1390_v50 = vld [vmem:[%s2321_s0 + $0x188] sm:$0xff] }
  0x12   :  { %1536 = vmatmul.mubr.msk.f32.gmra.mrb[6].mxu0 %vm44_vm1, %v29_v17  ;;  %v1391_v51 = vld [vmem:[%s2321_s0 + $0x190] sm:$0xff]  ;;  %v1392_v52 = vld [vmem:[%s2321_s0 + $0x198] sm:$0xff]  ;;  %v1393_v53 = vld [vmem:[%s2321_s0 + $0x1a0] sm:$0xff] }
  0x13   :  { %1578 = vmatprep.mubr.msk.f32.mxu0 %vm44_vm1, %v1356_v18  ;;  %v1394_v54 = vld [vmem:[%s2321_s0 + $0x1a8] sm:$0xff]  ;;  %v1395_v55 = vld [vmem:[%s2321_s0 + $0x1b0] sm:$0xff]  ;;  %v1396_v56 = vld [vmem:[%s2321_s0 + $0x1b8] sm:$0xff] }
  0x14   :  { %1553 = vmatmul.mubr.msk.f32.vlgmr.msra.gmra.mrb[8].mxu1 %vm44_vm1, %v1324_v19  ;;  %v1397_v57 = vld [vmem:[%s2321_s0 + $0x1c0] sm:$0xff]  ;;  %v1398_v58 = vld [vmem:[%s2321_s0 + $0x1c8] sm:$0xff]  ;;  %v1399_v59 = vld [vmem:[%s2321_s0 + $0x1d0] sm:$0xff] }
  0x15   :  { %1603 = vmatpush3.msk.msra.mxu1 %vm93_vm0, %v20_v0  ;;  %1555 = vmatprep.mubr.msk.f32.mxu1 %vm44_vm1, %v1325_v20  ;;  %v1400_v60 = vld [vmem:[%s2321_s0 + $0x1d8] sm:$0xff]  ;;  %v1401_v61 = vld [vmem:[%s2321_s0 + $0x1e0] sm:$0xff]  ;;  %v1402_v62 = vld [vmem:[%s2321_s0 + $0x1e8] sm:$0xff] }
  0x16   :  { %1579 = vmatmul.mubr.msk.f32.vlgmr.msra.gmra.mrb[8].mxu0 %vm44_vm1, %v1357_v21  ;;  %v1403_v63 = vld [vmem:[%s2321_s0 + $0x1f0] sm:$0xff]  ;;  %v1404_v0 = vld [vmem:[%s2321_s0 + $0x1f8] sm:$0xff]  ;;  %v1067_v1 = vld [vmem:[%s2322_s3] sm:$0xff] }
  0x17   :  { %1581 = vmatprep.mubr.msk.f32.mxu0 %vm44_vm1, %v1358_v22  ;;  %1628 = vmatprep.subr.mxu0 %v1067_v1  ;;  %v1961_v8 = vld [vmem:[%s2323_s2] ss:$0 sm:$0xff] }
  0x18   :  { %1556 = vmatmul.mubr.msk.f32.gmra.mrb[10].mxu1 %vm44_vm1, %v1326_v23  ;;  %1629 = vmatpush3.msra.mxu0 %v1067_v1  ;;  %v1977_v23 = vand.u32 127, %v1032_v12 }
  0x19   :  { %1558 = vmatprep.mubr.msk.f32.mxu1 %vm44_vm1, %v1327_v24 }
  0x1a   :  { %1582 = vmatmul.mubr.msk.f32.gmra.mrb[10].mxu0 %vm44_vm1, %v1359_v25  ;;  %vm1034_vm2 = vcmp.lt.s32.totalorder %v1977_v23, 4 }
  0x1b   :  { %1584 = vmatprep.mubr.msk.f32.mxu0 %vm44_vm1, %v1360_v26 }
  0x1c   :  { %1559 = vmatmul.mubr.msk.f32.gmra.mrb[12].mxu1 %vm44_vm1, %v1328_v27 }
  0x1d   :  { %1561 = vmatprep.mubr.msk.f32.mxu1 %vm44_vm1, %v1329_v28 }
  0x1e   :  { %1585 = vmatmul.mubr.msk.f32.gmra.mrb[12].mxu0 %vm44_vm1, %v1361_v29 }
  0x1f   :  { %1587 = vmatprep.mubr.msk.f32.mxu0 %vm44_vm1, %v1362_v30 }
  0x20   :  { %1562 = vmatmul.mubr.msk.f32.gmra.mrb[14].mxu1 %vm44_vm1, %v1330_v31 }
  0x21   :  { %1564 = vmatprep.mubr.msk.f32.mxu1 %vm44_vm1, %v1331_v32 }
  0x22   :  { %1588 = vmatmul.mubr.msk.f32.gmra.mrb[14].mxu0 %vm44_vm1, %v1363_v33 }
  0x23   :  { %1590 = vmatprep.mubr.msk.f32.mxu0 %vm44_vm1, %v1364_v34 }
  0x24   :  { %1565 = vmatmul.mubr.msk.f32.gmra.mrb[16].mxu1 %vm44_vm1, %v1332_v35 }
  0x25   :  { %1567 = vmatprep.mubr.msk.f32.mxu1 %vm44_vm1, %v1333_v36 }
  0x26   :  { %1591 = vmatmul.mubr.msk.f32.gmra.mrb[16].mxu0 %vm44_vm1, %v1365_v37 }
  0x27   :  { %1593 = vmatprep.mubr.msk.f32.mxu0 %vm44_vm1, %v1366_v38 }
  0x28   :  { %1568 = vmatmul.mubr.msk.f32.gmra.mrb[18].mxu1 %vm44_vm1, %v1334_v39 }
  0x29   :  { %1570 = vmatprep.mubr.msk.f32.mxu1 %vm44_vm1, %v1335_v40 }
  0x2a   :  { %1594 = vmatmul.mubr.msk.f32.gmra.mrb[18].mxu0 %vm44_vm1, %v1367_v41 }
  0x2b   :  { %1596 = vmatprep.mubr.msk.f32.mxu0 %vm44_vm1, %v1368_v42 }
  0x2c   :  { %1571 = vmatmul.mubr.msk.f32.gmra.mrb[20].mxu1 %vm44_vm1, %v1336_v43 }
  0x2d   :  { %1573 = vmatprep.mubr.msk.f32.mxu1 %vm44_vm1, %v1337_v44 }
  0x2e   :  { %1597 = vmatmul.mubr.msk.f32.gmra.mrb[20].mxu0 %vm44_vm1, %v1369_v45 }
  0x2f   :  { %1599 = vmatprep.mubr.msk.f32.mxu0 %vm44_vm1, %v1370_v46 }
  0x30   :  { %1574 = vmatmul.mubr.msk.f32.gmra.mrb[22].mxu1 %vm44_vm1, %v1338_v47 }
  0x31   :  { %1604 = vmatprep.mubr.msk.f32.mxu1 %vm44_vm1, %v1389_v48 }
  0x32   :  { %1600 = vmatmul.mubr.msk.f32.gmra.mrb[22].mxu0 %vm44_vm1, %v1371_v49 }
  0x34   :  { %1605 = vmatmul.mubr.msk.f32.vlgmr.msra.gmra.mrb[24].mxu1 %vm44_vm1, %v1390_v50 }
  0x35   :  { %1607 = vmatprep.mubr.msk.f32.mxu1 %vm44_vm1, %v1391_v51 }
  0x38   :  { %1608 = vmatmul.mubr.msk.f32.gmra.mrb[26].mxu1 %vm44_vm1, %v1392_v52 }
  0x39   :  { %1610 = vmatprep.mubr.msk.f32.mxu1 %vm44_vm1, %v1393_v53 }
  0x3c   :  { %1611 = vmatmul.mubr.msk.f32.gmra.mrb[28].mxu1 %vm44_vm1, %v1394_v54 }
  0x3d   :  { %1613 = vmatprep.mubr.msk.f32.mxu1 %vm44_vm1, %v1395_v55 }
  0x40   :  { %1614 = vmatmul.mubr.msk.f32.gmra.mrb[30].mxu1 %vm44_vm1, %v1396_v56 }
  0x41   :  { %1616 = vmatprep.mubr.msk.f32.mxu1 %vm44_vm1, %v1397_v57 }
  0x44   :  { %1617 = vmatmul.mubr.msk.f32.gmra.mrb[32].mxu1 %vm44_vm1, %v1398_v58 }
  0x45   :  { %1619 = vmatprep.mubr.msk.f32.mxu1 %vm44_vm1, %v1399_v59 }
  0x48   :  { %1620 = vmatmul.mubr.msk.f32.gmra.mrb[34].mxu1 %vm44_vm1, %v1400_v60 }
  0x49   :  { %1622 = vmatprep.mubr.msk.f32.mxu1 %vm44_vm1, %v1401_v61 }
  0x4c   :  { %1623 = vmatmul.mubr.msk.f32.gmra.mrb[36].mxu1 %vm44_vm1, %v1402_v62 }
  0x4d   :  { %1625 = vmatprep.mubr.msk.f32.mxu1 %vm44_vm1, %v1403_v63 }
  0x50   :  { %1626 = vmatmul.mubr.msk.f32.gmra.mrb[38].mxu1 %vm44_vm1, %v1404_v0 }
  0xd7   :  { %v1540_v2 = vpop.f32.mrb[0].mxu1 }
  0xd8   :  { %v203_v3 = vpop.f32.mrb[1].mxu1  ;;  %v1964_v13 = vadd.f32 %v1540_v2, %v1961_v8 }
  0xd9   :  { %v1528_v4 = vpop.f32.mrb[0].mxu0  ;;  %v1967_v15 = vadd.f32 %v1961_v8, %v203_v3 }
  0xda   :  { %v163_v5 = vpop.f32.mrb[1].mxu0  ;;  %v169_v17 = vadd.f32 %v1528_v4, %v1961_v8  ;;  %v251_v24 = vmax.f32 %v1964_v13, 0.0 }
  0xdb   :  { %v1543_v6 = vpop.f32.mrb[2].mxu1  ;;  %v164_v18 = vadd.f32 %v1961_v8, %v163_v5  ;;  %v250_v29 = vmax.f32 %v1967_v15, 0.0 }
  0xdc   :  { %v213_v7 = vpop.f32.mrb[3].mxu1  ;;  %v1972_v20 = vadd.f32 %v1543_v6, %v1961_v8  ;;  %v243_v34 = vmax.f32 %v169_v17, 0.0 }
  0xdd   :  { %v1531_v9 = vpop.f32.mrb[2].mxu0  ;;  %v1975_v21 = vadd.f32 %v1961_v8, %v213_v7  ;;  %v242_v35 = vmax.f32 %v164_v18, 0.0 }
  0xde   :  { %v173_v10 = vpop.f32.mrb[3].mxu0  ;;  %v179_v26 = vadd.f32 %v1531_v9, %v1961_v8  ;;  %v253_v39 = vmax.f32 %v1972_v20, 0.0 }
  0xdf   :  { %v1546_v11 = vpop.f32.mrb[4].mxu1  ;;  %v1985_v27 = vadd.f32 %v1961_v8, %v173_v10  ;;  %v252_v40 = vmax.f32 %v1975_v21, 0.0 }
  0xe0   :  { %v223_v14 = vpop.f32.mrb[5].mxu1  ;;  %v1981_v25 = vadd.f32 %v1546_v11, %v1961_v8  ;;  %v245_v45 = vmax.f32 %v179_v26, 0.0 }
  0xe1   :  { %v1534_v16 = vpop.f32.mrb[4].mxu0  ;;  %v1989_v30 = vadd.f32 %v1961_v8, %v223_v14  ;;  %v244_v46 = vmax.f32 %v1985_v27, 0.0 }
  0xe2   :  { %v183_v19 = vpop.f32.mrb[5].mxu0  ;;  %v1992_v31 = vadd.f32 %v1534_v16, %v1961_v8  ;;  %v255_v44 = vmax.f32 %v1981_v25, 0.0 }
  0xe3   :  { %v1549_v22 = vpop.f32.mrb[6].mxu1  ;;  %v1995_v32 = vadd.f32 %v1961_v8, %v183_v19  ;;  %v254_v49 = vmax.f32 %v1989_v30, 0.0 }
  0xe4   :  { %v233_v28 = vpop.f32.mrb[7].mxu1  ;;  %v1998_v36 = vadd.f32 %v1549_v22, %v1961_v8  ;;  %v247_v50 = vmax.f32 %v1992_v31, 0.0 }
  0xe5   :  { %v1537_v33 = vpop.f32.mrb[6].mxu0  ;;  %v2001_v37 = vadd.f32 %v1961_v8, %v233_v28  ;;  %v246_v51 = vmax.f32 %v1995_v32, 0.0 }
  0xe6   :  { %v193_v38 = vpop.f32.mrb[7].mxu0  ;;  %v2006_v41 = vadd.f32 %v1537_v33, %v1961_v8  ;;  %v257_v54 = vmax.f32 %v1998_v36, 0.0 }
  0xe7   :  { %v1554_v42 = vpop.f32.mrb[8].mxu1  ;;  %v2009_v43 = vadd.f32 %v1961_v8, %v193_v38  ;;  %v256_v55 = vmax.f32 %v2001_v37, 0.0 }
  0xe8   :  { %v395_v47 = vadd.f32 %v1554_v42, %v1961_v8  ;;  %v389_v48 = vpop.f32.mrb[9].mxu1  ;;  %v249_v59 = vmax.f32 %v2006_v41, 0.0 }
  0xe9   :  { %v390_v52 = vadd.f32 %v1961_v8, %v389_v48  ;;  %v1580_v53 = vpop.f32.mrb[8].mxu0  ;;  %v248_v60 = vmax.f32 %v2009_v43, 0.0 }
  0xea   :  { %v469_v56 = vmax.f32 %v395_v47, 0.0  ;;  %v653_v57 = vadd.f32 %v1580_v53, %v1961_v8  ;;  %v647_v58 = vpop.f32.mrb[9].mxu0 }
  0xeb   :  { %v468_v61 = vmax.f32 %v390_v52, 0.0  ;;  %v648_v62 = vadd.f32 %v1961_v8, %v647_v58  ;;  %v1557_v63 = vpop.f32.mrb[10].mxu1 }
  0xec   :  { %v485_v0 = vadd.f32 %v469_v56, %v243_v34  ;;  %v501_v1 = vmax.f32 %v243_v34, %v469_v56  ;;  %v727_v2 = vmax.f32 %v653_v57, 0.0  ;;  %v405_v3 = vadd.f32 %v1557_v63, %v1961_v8  ;;  %v399_v4 = vpop.f32.mrb[11].mxu1 }
  0xed   :  { %v484_v5 = vadd.f32 %v468_v61, %v242_v35  ;;  %v500_v6 = vmax.f32 %v242_v35, %v468_v61  ;;  %v726_v7 = vmax.f32 %v648_v62, 0.0  ;;  %v400_v9 = vadd.f32 %v1961_v8, %v399_v4  ;;  %v1583_v10 = vpop.f32.mrb[10].mxu0 }
  0xee   :  { %v2026_v11 = vadd.f32 %v727_v2, %v485_v0  ;;  %v2028_v12 = vmax.f32 %v501_v1, %v727_v2  ;;  %v471_v14 = vmax.f32 %v405_v3, 0.0  ;;  %v663_v16 = vadd.f32 %v1583_v10, %v1961_v8  ;;  %v657_v17 = vpop.f32.mrb[11].mxu0 }
  0xef   :  { %v2031_v18 = vadd.f32 %v726_v7, %v484_v5  ;;  %v2033_v19 = vmax.f32 %v500_v6, %v726_v7  ;;  %v470_v22 = vmax.f32 %v400_v9, 0.0  ;;  %v658_v26 = vadd.f32 %v1961_v8, %v657_v17  ;;  %v1560_v27 = vpop.f32.mrb[12].mxu1 }
  0xf0   :  { %v487_v28 = vadd.f32 %v471_v14, %v245_v45  ;;  %v503_v31 = vmax.f32 %v245_v45, %v471_v14  ;;  %v729_v32 = vmax.f32 %v663_v16, 0.0  ;;  %v415_v33 = vadd.f32 %v1560_v27, %v1961_v8  ;;  %v409_v34 = vpop.f32.mrb[13].mxu1 }
  0xf1   :  { %v486_v35 = vadd.f32 %v470_v22, %v244_v46  ;;  %v502_v38 = vmax.f32 %v244_v46, %v470_v22  ;;  %v728_v42 = vmax.f32 %v658_v26, 0.0  ;;  %v410_v47 = vadd.f32 %v1961_v8, %v409_v34  ;;  %v1586_v48 = vpop.f32.mrb[12].mxu0 }
  0xf2   :  { %v2038_v52 = vadd.f32 %v729_v32, %v487_v28  ;;  %v2040_v53 = vmax.f32 %v503_v31, %v729_v32  ;;  %v473_v56 = vmax.f32 %v415_v33, 0.0  ;;  %v673_v57 = vadd.f32 %v1586_v48, %v1961_v8  ;;  %v667_v58 = vpop.f32.mrb[13].mxu0 }
  0xf3   :  { %v2043_v61 = vadd.f32 %v728_v42, %v486_v35  ;;  %v2045_v45 = vmax.f32 %v502_v38, %v728_v42  ;;  %v472_v62 = vmax.f32 %v410_v47, 0.0  ;;  %v668_v63 = vadd.f32 %v1961_v8, %v667_v58  ;;  %v1563_v46 = vpop.f32.mrb[14].mxu1 }
  0xf4   :  { %v489_v0 = vadd.f32 %v473_v56, %v247_v50  ;;  %v505_v1 = vmax.f32 %v247_v50, %v473_v56  ;;  %v731_v2 = vmax.f32 %v673_v57, 0.0  ;;  %v425_v3 = vadd.f32 %v1563_v46, %v1961_v8  ;;  %v419_v4 = vpop.f32.mrb[15].mxu1 }
  0xf5   :  { %v488_v5 = vadd.f32 %v472_v62, %v246_v51  ;;  %v504_v6 = vmax.f32 %v246_v51, %v472_v62  ;;  %v730_v7 = vmax.f32 %v668_v63, 0.0  ;;  %v420_v9 = vadd.f32 %v1961_v8, %v419_v4  ;;  %v1589_v10 = vpop.f32.mrb[14].mxu0 }
  0xf6   :  { %v2050_v14 = vadd.f32 %v731_v2, %v489_v0  ;;  %v2052_v16 = vmax.f32 %v505_v1, %v731_v2  ;;  %v475_v17 = vmax.f32 %v425_v3, 0.0  ;;  %v683_v22 = vadd.f32 %v1589_v10, %v1961_v8  ;;  %v677_v26 = vpop.f32.mrb[15].mxu0 }
  0xf7   :  { %v2055_v27 = vadd.f32 %v730_v7, %v488_v5  ;;  %v2057_v50 = vmax.f32 %v504_v6, %v730_v7  ;;  %v474_v28 = vmax.f32 %v420_v9, 0.0  ;;  %v678_v31 = vadd.f32 %v1961_v8, %v677_v26  ;;  %v1566_v51 = vpop.f32.mrb[16].mxu1 }
  0xf8   :  { %v491_v32 = vadd.f32 %v475_v17, %v249_v59  ;;  %v507_v33 = vmax.f32 %v249_v59, %v475_v17  ;;  %v733_v34 = vmax.f32 %v683_v22, 0.0  ;;  %v435_v35 = vadd.f32 %v1566_v51, %v1961_v8  ;;  %v429_v38 = vpop.f32.mrb[17].mxu1 }
  0xf9   :  { %v490_v42 = vadd.f32 %v474_v28, %v248_v60  ;;  %v506_v47 = vmax.f32 %v248_v60, %v474_v28  ;;  %v732_v48 = vmax.f32 %v678_v31, 0.0  ;;  %v430_v56 = vadd.f32 %v1961_v8, %v429_v38  ;;  %v1592_v57 = vpop.f32.mrb[16].mxu0 }
  0xfa   :  { %v2070_v58 = vadd.f32 %v733_v34, %v491_v32  ;;  %v2072_v62 = vmax.f32 %v507_v33, %v733_v34  ;;  %v477_v41 = vmax.f32 %v435_v35, 0.0  ;;  %v693_v59 = vadd.f32 %v1592_v57, %v1961_v8  ;;  %v687_v63 = vpop.f32.mrb[17].mxu0 }
  0xfb   :  { %v2075_v46 = vadd.f32 %v732_v48, %v490_v42  ;;  %v2077_v0 = vmax.f32 %v506_v47, %v732_v48  ;;  %v476_v1 = vmax.f32 %v430_v56, 0.0  ;;  %v688_v43 = vadd.f32 %v1961_v8, %v687_v63  ;;  %v1569_v60 = vpop.f32.mrb[18].mxu1 }
  0xfc   :  { %v493_v2 = vadd.f32 %v477_v41, %v251_v24  ;;  %v509_v3 = vmax.f32 %v251_v24, %v477_v41  ;;  %v735_v4 = vmax.f32 %v693_v59, 0.0  ;;  %v445_v5 = vadd.f32 %v1569_v60, %v1961_v8  ;;  %v439_v6 = vpop.f32.mrb[19].mxu1 }
  0xfd   :  { %v492_v7 = vadd.f32 %v476_v1, %v250_v29  ;;  %v508_v9 = vmax.f32 %v250_v29, %v476_v1  ;;  %v734_v10 = vmax.f32 %v688_v43, 0.0  ;;  %v440_v17 = vadd.f32 %v1961_v8, %v439_v6  ;;  %v1595_v22 = vpop.f32.mrb[18].mxu0 }
  0xfe   :  { %v2090_v26 = vadd.f32 %v735_v4, %v493_v2  ;;  %v2092_v28 = vmax.f32 %v509_v3, %v735_v4  ;;  %v479_v13 = vmax.f32 %v445_v5, 0.0  ;;  %v703_v24 = vadd.f32 %v1595_v22, %v1961_v8  ;;  %v697_v31 = vpop.f32.mrb[19].mxu0 }
  0xff   :  { %v2095_v51 = vadd.f32 %v734_v10, %v492_v7  ;;  %v2097_v32 = vmax.f32 %v508_v9, %v734_v10  ;;  %v478_v33 = vmax.f32 %v440_v17, 0.0  ;;  %v698_v15 = vadd.f32 %v1961_v8, %v697_v31  ;;  %v1572_v29 = vpop.f32.mrb[20].mxu1 }
 0x100   :  { %v495_v34 = vadd.f32 %v479_v13, %v253_v39  ;;  %v511_v35 = vmax.f32 %v253_v39, %v479_v13  ;;  %v737_v38 = vmax.f32 %v703_v24, 0.0  ;;  %v455_v42 = vadd.f32 %v1572_v29, %v1961_v8  ;;  %v449_v47 = vpop.f32.mrb[21].mxu1 }
 0x101   :  { %v494_v48 = vadd.f32 %v478_v33, %v252_v40  ;;  %v510_v56 = vmax.f32 %v252_v40, %v478_v33  ;;  %v736_v57 = vmax.f32 %v698_v15, 0.0  ;;  %v450_v41 = vadd.f32 %v1961_v8, %v449_v47  ;;  %v1598_v59 = vpop.f32.mrb[20].mxu0 }
 0x102   :  { %v2110_v63 = vadd.f32 %v737_v38, %v495_v34  ;;  %v2112_v1 = vmax.f32 %v511_v35, %v737_v38  ;;  %v481_v20 = vmax.f32 %v455_v42, 0.0  ;;  %v713_v39 = vadd.f32 %v1598_v59, %v1961_v8  ;;  %v707_v43 = vpop.f32.mrb[21].mxu0 }
 0x103   :  { %v2115_v60 = vadd.f32 %v736_v57, %v494_v48  ;;  %v2117_v2 = vmax.f32 %v510_v56, %v736_v57  ;;  %v480_v3 = vmax.f32 %v450_v41, 0.0  ;;  %v708_v21 = vadd.f32 %v1961_v8, %v707_v43  ;;  %v1575_v40 = vpop.f32.mrb[22].mxu1 }
 0x104   :  { %v497_v4 = vadd.f32 %v481_v20, %v255_v44  ;;  %v513_v5 = vmax.f32 %v255_v44, %v481_v20  ;;  %v739_v6 = vmax.f32 %v713_v39, 0.0  ;;  %v465_v7 = vadd.f32 %v1575_v40, %v1961_v8  ;;  %v459_v9 = vpop.f32.mrb[23].mxu1 }
 0x105   :  { %v496_v10 = vadd.f32 %v480_v3, %v254_v49  ;;  %v512_v17 = vmax.f32 %v254_v49, %v480_v3  ;;  %v738_v22 = vmax.f32 %v708_v21, 0.0  ;;  %v460_v13 = vadd.f32 %v1961_v8, %v459_v9  ;;  %v1601_v24 = vpop.f32.mrb[22].mxu0 }
 0x106   :  { %v2130_v31 = vadd.f32 %v739_v6, %v497_v4  ;;  %v2132_v33 = vmax.f32 %v513_v5, %v739_v6  ;;  %v483_v25 = vmax.f32 %v465_v7, 0.0  ;;  %v723_v44 = vadd.f32 %v1601_v24, %v1961_v8  ;;  %v717_v15 = vpop.f32.mrb[23].mxu0 }
 0x107   :  { %v2135_v29 = vadd.f32 %v738_v22, %v496_v10  ;;  %v2137_v34 = vmax.f32 %v512_v17, %v738_v22  ;;  %v482_v35 = vmax.f32 %v460_v13, 0.0  ;;  %v718_v30 = vadd.f32 %v1961_v8, %v717_v15  ;;  %v1606_v49 = vpop.f32.mrb[24].mxu1 }
 0x108   :  { %v499_v38 = vadd.f32 %v483_v25, %v257_v54  ;;  %v515_v42 = vmax.f32 %v257_v54, %v483_v25  ;;  %v741_v47 = vmax.f32 %v723_v44, 0.0  ;;  %v911_v48 = vadd.f32 %v1606_v49, %v1961_v8  ;;  %v905_v56 = vpop.f32.mrb[25].mxu1 }
 0x109   :  { %v498_v57 = vadd.f32 %v482_v35, %v256_v55  ;;  %v514_v41 = vmax.f32 %v256_v55, %v482_v35  ;;  %v740_v59 = vmax.f32 %v718_v30, 0.0  ;;  %v906_v20 = vadd.f32 %v1961_v8, %v905_v56 }
 0x10a   :  { %v2150_v39 = vadd.f32 %v741_v47, %v499_v38  ;;  %v2152_v43 = vmax.f32 %v515_v42, %v741_v47  ;;  %v985_v3 = vmax.f32 %v911_v48, 0.0 }
 0x10b   :  { %v2154_v36 = vadd.f32 %v740_v59, %v498_v57  ;;  %v2156_v54 = vmax.f32 %v514_v41, %v740_v59  ;;  %v984_v21 = vmax.f32 %v906_v20, 0.0  ;;  %v1609_v40 = vpop.f32.mrb[26].mxu1 }
 0x10c   :  { %v1001_v4 = vadd.f32 %v985_v3, %v2026_v11  ;;  %v1017_v5 = vmax.f32 %v2028_v12, %v985_v3  ;;  %v921_v37 = vadd.f32 %v1609_v40, %v1961_v8  ;;  %v915_v55 = vpop.f32.mrb[27].mxu1 }
 0x10d   :  { %v1000_v6 = vadd.f32 %v984_v21, %v2031_v18  ;;  %v1016_v7 = vmax.f32 %v2033_v19, %v984_v21  ;;  %v916_v9 = vadd.f32 %v1961_v8, %v915_v55 }
 0x10e   :  { %v1036_v10 = vmul.f32 0.25, %v1001_v4  ;;  %v987_v17 = vmax.f32 %v921_v37, 0.0 }
 0x10f   :  { %v1035_v22 = vmul.f32 0.25, %v1000_v6  ;;  %v986_v13 = vmax.f32 %v916_v9, 0.0  ;;  %v1612_v24 = vpop.f32.mrb[28].mxu1 }
 0x110   :  { %v1052_v11 = vsel %vm1034_vm2, %v1036_v10, %v1017_v5  ;;  %v1003_v12 = vadd.f32 %v987_v17, %v2038_v52  ;;  %v1019_v25 = vmax.f32 %v2040_v53, %v987_v17  ;;  %v931_v44 = vadd.f32 %v1612_v24, %v1961_v8  ;;  %v925_v18 = vpop.f32.mrb[29].mxu1 }
 0x111   :  { %v1002_v19 = vadd.f32 %v986_v13, %v2043_v61  ;;  %v1018_v15 = vmax.f32 %v2045_v45, %v986_v13  ;;  %v926_v35 = vadd.f32 %v1961_v8, %v925_v18  ;;  %v1051_v30 = vsel %vm1034_vm2, %v1035_v22, %v1016_v7 }
 0x112   :  { %v1038_v49 = vmul.f32 0.25, %v1003_v12  ;;  %v989_v38 = vmax.f32 %v931_v44, 0.0  ;;  %1630 = vmatprep.mubr.msk.f32.mxu0 %vm1075_vm3, %v1051_v30 }
 0x113   :  { %v1037_v42 = vmul.f32 0.25, %v1002_v19  ;;  %v988_v52 = vmax.f32 %v926_v35, 0.0  ;;  %v1615_v47 = vpop.f32.mrb[30].mxu1  ;;  %1631 = vmatmul.mubr.msk.f32.vlgmr.msra.gmra.mrb[24].mxu0 %vm1075_vm3, %v1052_v11 }
 0x114   :  { %v1005_v53 = vadd.f32 %v989_v38, %v2050_v14  ;;  %v1021_v61 = vmax.f32 %v2052_v16, %v989_v38  ;;  %v941_v45 = vadd.f32 %v1615_v47, %v1961_v8  ;;  %v935_v48 = vpop.f32.mrb[31].mxu1  ;;  %v1054_v56 = vsel %vm1034_vm2, %v1038_v49, %v1019_v25 }
 0x115   :  { %v1004_v57 = vadd.f32 %v988_v52, %v2055_v27  ;;  %v1020_v41 = vmax.f32 %v2057_v50, %v988_v52  ;;  %v936_v59 = vadd.f32 %v1961_v8, %v935_v48  ;;  %v1053_v20 = vsel %vm1034_vm2, %v1037_v42, %v1018_v15 }
 0x116   :  { %v1040_v3 = vmul.f32 0.25, %v1005_v53  ;;  %v991_v21 = vmax.f32 %v941_v45, 0.0  ;;  %1633 = vmatprep.mubr.msk.f32.mxu0 %vm1075_vm3, %v1053_v20 }
 0x117   :  { %v1039_v14 = vmul.f32 0.25, %v1004_v57  ;;  %v990_v16 = vmax.f32 %v936_v59, 0.0  ;;  %v1618_v40 = vpop.f32.mrb[32].mxu1  ;;  %1634 = vmatmul.mubr.msk.f32.gmra.mrb[26].mxu0 %vm1075_vm3, %v1054_v56 }
 0x118   :  { %v1007_v4 = vadd.f32 %v991_v21, %v2070_v58  ;;  %v1023_v27 = vmax.f32 %v2072_v62, %v991_v21  ;;  %v951_v50 = vadd.f32 %v1618_v40, %v1961_v8  ;;  %v945_v5 = vpop.f32.mrb[33].mxu1  ;;  %v1056_v37 = vsel %vm1034_vm2, %v1040_v3, %v1021_v61 }
 0x119   :  { %v1006_v55 = vadd.f32 %v990_v16, %v2075_v46  ;;  %v1022_v6 = vmax.f32 %v2077_v0, %v990_v16  ;;  %v946_v7 = vadd.f32 %v1961_v8, %v945_v5  ;;  %v1055_v9 = vsel %vm1034_vm2, %v1039_v14, %v1020_v41 }
 0x11a   :  { %v1042_v10 = vmul.f32 0.25, %v1007_v4  ;;  %v993_v17 = vmax.f32 %v951_v50, 0.0  ;;  %1636 = vmatprep.mubr.msk.f32.mxu0 %vm1075_vm3, %v1055_v9 }
 0x11b   :  { %v1041_v58 = vmul.f32 0.25, %v1006_v55  ;;  %v992_v62 = vmax.f32 %v946_v7, 0.0  ;;  %v1621_v22 = vpop.f32.mrb[34].mxu1  ;;  %1637 = vmatmul.mubr.msk.f32.gmra.mrb[28].mxu0 %vm1075_vm3, %v1056_v37 }
 0x11c   :  { %v1009_v13 = vadd.f32 %v993_v17, %v2090_v26  ;;  %v1025_v46 = vmax.f32 %v2092_v28, %v993_v17  ;;  %v961_v0 = vadd.f32 %v1621_v22, %v1961_v8  ;;  %v955_v24 = vpop.f32.mrb[35].mxu1  ;;  %v1058_v11 = vsel %vm1034_vm2, %v1042_v10, %v1023_v27 }
 0x11d   :  { %v1008_v12 = vadd.f32 %v992_v62, %v2095_v51  ;;  %v1024_v25 = vmax.f32 %v2097_v32, %v992_v62  ;;  %v956_v44 = vadd.f32 %v1961_v8, %v955_v24  ;;  %v1057_v18 = vsel %vm1034_vm2, %v1041_v58, %v1022_v6 }
 0x11e   :  { %v1044_v19 = vmul.f32 0.25, %v1009_v13  ;;  %v995_v15 = vmax.f32 %v961_v0, 0.0  ;;  %1639 = vmatprep.mubr.msk.f32.mxu0 %vm1075_vm3, %v1057_v18 }
 0x11f   :  { %v1043_v26 = vmul.f32 0.25, %v1008_v12  ;;  %v994_v28 = vmax.f32 %v956_v44, 0.0  ;;  %v1624_v35 = vpop.f32.mrb[36].mxu1  ;;  %1640 = vmatmul.mubr.msk.f32.gmra.mrb[30].mxu0 %vm1075_vm3, %v1058_v11 }
 0x120   :  { %v1011_v30 = vadd.f32 %v995_v15, %v2110_v63  ;;  %v1027_v51 = vmax.f32 %v2112_v1, %v995_v15  ;;  %v971_v32 = vadd.f32 %v1624_v35, %v1961_v8  ;;  %v965_v49 = vpop.f32.mrb[37].mxu1  ;;  %v1060_v38 = vsel %vm1034_vm2, %v1044_v19, %v1025_v46 }
 0x121   :  { %v1010_v42 = vadd.f32 %v994_v28, %v2115_v60  ;;  %v1026_v52 = vmax.f32 %v2117_v2, %v994_v28  ;;  %v966_v47 = vadd.f32 %v1961_v8, %v965_v49  ;;  %v1059_v53 = vsel %vm1034_vm2, %v1043_v26, %v1024_v25 }
 0x122   :  { %v1046_v61 = vmul.f32 0.25, %v1011_v30  ;;  %v997_v45 = vmax.f32 %v971_v32, 0.0  ;;  %1642 = vmatprep.mubr.msk.f32.mxu0 %vm1075_vm3, %v1059_v53 }
 0x123   :  { %v1045_v63 = vmul.f32 0.25, %v1010_v42  ;;  %v996_v1 = vmax.f32 %v966_v47, 0.0  ;;  %v1627_v48 = vpop.f32.mrb[38].mxu1  ;;  %1643 = vmatmul.mubr.msk.f32.gmra.mrb[32].mxu0 %vm1075_vm3, %v1060_v38 }
 0x124   :  { %v1013_v56 = vadd.f32 %v997_v45, %v2130_v31  ;;  %v1029_v60 = vmax.f32 %v2132_v33, %v997_v45  ;;  %v981_v2 = vadd.f32 %v1627_v48, %v1961_v8  ;;  %v975_v57 = vpop.f32.mrb[39].mxu1  ;;  %v1062_v41 = vsel %vm1034_vm2, %v1046_v61, %v1027_v51 }
 0x125   :  { %v1012_v59 = vadd.f32 %v996_v1, %v2135_v29  ;;  %v1028_v20 = vmax.f32 %v2137_v34, %v996_v1  ;;  %v976_v3 = vadd.f32 %v1961_v8, %v975_v57  ;;  %v1061_v21 = vsel %vm1034_vm2, %v1045_v63, %v1026_v52 }
 0x126   :  { %v1048_v14 = vmul.f32 0.25, %v1013_v56  ;;  %v999_v16 = vmax.f32 %v981_v2, 0.0  ;;  %1645 = vmatprep.mubr.msk.f32.mxu0 %vm1075_vm3, %v1061_v21 }
 0x127   :  { %v1047_v31 = vmul.f32 0.25, %v1012_v59  ;;  %v998_v33 = vmax.f32 %v976_v3, 0.0  ;;  %1646 = vmatmul.mubr.msk.f32.gmra.mrb[34].mxu0 %vm1075_vm3, %v1062_v41 }
 0x128   :  { %v1015_v40 = vadd.f32 %v999_v16, %v2150_v39  ;;  %v1031_v4 = vmax.f32 %v2152_v43, %v999_v16  ;;  %v1064_v29 = vsel %vm1034_vm2, %v1048_v14, %v1029_v60 }
 0x129   :  { %v1014_v8 = vadd.f32 %v998_v33, %v2154_v36  ;;  %v1030_v34 = vmax.f32 %v2156_v54, %v998_v33  ;;  %v1063_v27 = vsel %vm1034_vm2, %v1047_v31, %v1028_v20  ;;  %v1422_v36 = vld [vmem:[%s2324_s4] ss:$0 sm:$0xff] }
 0x12a   :  { %v1050_v50 = vmul.f32 0.25, %v1015_v40  ;;  %1648 = vmatprep.mubr.msk.f32.mxu0 %vm1075_vm3, %v1063_v27 }
 0x12b   :  { %v1049_v5 = vmul.f32 0.25, %v1014_v8  ;;  %1649 = vmatmul.mubr.msk.f32.gmra.mrb[36].mxu0 %vm1075_vm3, %v1064_v29 }
 0x12c   :  { %v1066_v39 = vsel %vm1034_vm2, %v1050_v50, %v1031_v4 }
 0x12d   :  { %v1065_v43 = vsel %vm1034_vm2, %v1049_v5, %v1030_v34 }
 0x12e   :  { %1651 = vmatprep.mubr.msk.f32.mxu0 %vm1075_vm3, %v1065_v43 }
 0x12f   :  { %1652 = vmatmul.mubr.msk.f32.gmra.mrb[38].mxu0 %vm1075_vm3, %v1066_v39 }
 0x1e6   :  { %v1632_v54 = vpop.f32.mrb[24].mxu0 }
 0x1e7   :  { %v1196_v37 = vadd.f32 %v1632_v54, %v1422_v36  ;;  %v1190_v55 = vpop.f32.mrb[25].mxu0 }
 0x1e8   :  { %v1191_v6 = vadd.f32 %v1422_v36, %v1190_v55 }
 0x1e9   :  { %v1270_v7 = vmax.f32 %v1196_v37, 0.0 }
 0x1ea   :  { %v1269_v9 = vmax.f32 %v1191_v6, 0.0  ;;  %v1635_v10 = vpop.f32.mrb[26].mxu0 }
 0x1eb   :  { %1286 = vst.msk [vmem:[%s2325_s5 + $0x8] sm:$0xff] %vm44_vm1, %v1270_v7  ;;  %v1206_v23 = vadd.f32 %v1635_v10, %v1422_v36  ;;  %v1200_v17 = vpop.f32.mrb[27].mxu0 }
 0x1ec   :  { %1285 = vst.msk [vmem:[%s2325_s5] sm:$0xff] %vm44_vm1, %v1269_v9  ;;  %v1201_v58 = vadd.f32 %v1422_v36, %v1200_v17 }
 0x1ed   :  { %v1272_v62 = vmax.f32 %v1206_v23, 0.0 }
 0x1ee   :  { %v1271_v22 = vmax.f32 %v1201_v58, 0.0  ;;  %v1638_v13 = vpop.f32.mrb[28].mxu0 }
 0x1ef   :  { %1288 = vst.msk [vmem:[%s2325_s5 + $0x18] sm:$0xff] %vm44_vm1, %v1272_v62  ;;  %v1216_v46 = vadd.f32 %v1638_v13, %v1422_v36  ;;  %v1210_v0 = vpop.f32.mrb[29].mxu0 }
 0x1f0   :  { %1287 = vst.msk [vmem:[%s2325_s5 + $0x10] sm:$0xff] %vm44_vm1, %v1271_v22  ;;  %v1211_v24 = vadd.f32 %v1422_v36, %v1210_v0 }
 0x1f1   :  { %v1274_v11 = vmax.f32 %v1216_v46, 0.0 }
 0x1f2   :  { %v1273_v12 = vmax.f32 %v1211_v24, 0.0  ;;  %v1641_v25 = vpop.f32.mrb[30].mxu0 }
 0x1f3   :  { %1290 = vst.msk [vmem:[%s2325_s5 + $0x28] sm:$0xff] %vm44_vm1, %v1274_v11  ;;  %v1226_v44 = vadd.f32 %v1641_v25, %v1422_v36  ;;  %v1220_v18 = vpop.f32.mrb[31].mxu0 }
 0x1f4   :  { %1289 = vst.msk [vmem:[%s2325_s5 + $0x20] sm:$0xff] %vm44_vm1, %v1273_v12  ;;  %v1221_v19 = vadd.f32 %v1422_v36, %v1220_v18 }
 0x1f5   :  { %v1276_v15 = vmax.f32 %v1226_v44, 0.0 }
 0x1f6   :  { %v1275_v26 = vmax.f32 %v1221_v19, 0.0  ;;  %v1644_v28 = vpop.f32.mrb[32].mxu0 }
 0x1f7   :  { %1292 = vst.msk [vmem:[%s2325_s5 + $0x38] sm:$0xff] %vm44_vm1, %v1276_v15  ;;  %v1236_v35 = vadd.f32 %v1644_v28, %v1422_v36  ;;  %v1230_v30 = vpop.f32.mrb[33].mxu0 }
 0x1f8   :  { %1291 = vst.msk [vmem:[%s2325_s5 + $0x30] sm:$0xff] %vm44_vm1, %v1275_v26  ;;  %v1231_v51 = vadd.f32 %v1422_v36, %v1230_v30 }
 0x1f9   :  { %v1278_v32 = vmax.f32 %v1236_v35, 0.0 }
 0x1fa   :  { %v1277_v49 = vmax.f32 %v1231_v51, 0.0  ;;  %v1647_v38 = vpop.f32.mrb[34].mxu0 }
 0x1fb   :  { %1294 = vst.msk [vmem:[%s2325_s5 + $0x48] sm:$0xff] %vm44_vm1, %v1278_v32  ;;  %v1246_v42 = vadd.f32 %v1647_v38, %v1422_v36  ;;  %v1240_v52 = vpop.f32.mrb[35].mxu0 }
 0x1fc   :  { %1293 = vst.msk [vmem:[%s2325_s5 + $0x40] sm:$0xff] %vm44_vm1, %v1277_v49  ;;  %v1241_v47 = vadd.f32 %v1422_v36, %v1240_v52 }
 0x1fd   :  { %v1280_v53 = vmax.f32 %v1246_v42, 0.0 }
 0x1fe   :  { %v1279_v61 = vmax.f32 %v1241_v47, 0.0  ;;  %v1650_v45 = vpop.f32.mrb[36].mxu0 }
 0x1ff   :  { %1296 = vst.msk [vmem:[%s2325_s5 + $0x58] sm:$0xff] %vm44_vm1, %v1280_v53  ;;  %v1256_v63 = vadd.f32 %v1650_v45, %v1422_v36  ;;  %v1250_v1 = vpop.f32.mrb[37].mxu0 }
 0x200   :  { %1295 = vst.msk [vmem:[%s2325_s5 + $0x50] sm:$0xff] %vm44_vm1, %v1279_v61  ;;  %v1251_v48 = vadd.f32 %v1422_v36, %v1250_v1 }
 0x201   :  { %v1282_v56 = vmax.f32 %v1256_v63, 0.0 }
 0x202   :  { %v1281_v60 = vmax.f32 %v1251_v48, 0.0  ;;  %v1653_v2 = vpop.f32.mrb[38].mxu0 }
 0x203   :  { %1298 = vst.msk [vmem:[%s2325_s5 + $0x68] sm:$0xff] %vm44_vm1, %v1282_v56  ;;  %v1266_v57 = vadd.f32 %v1653_v2, %v1422_v36  ;;  %v1260_v41 = vpop.f32.mrb[39].mxu0 }
 0x204   :  { %1297 = vst.msk [vmem:[%s2325_s5 + $0x60] sm:$0xff] %vm44_vm1, %v1281_v60  ;;  %v1261_v59 = vadd.f32 %v1422_v36, %v1260_v41 }
 0x205   :  { %v1284_v20 = vmax.f32 %v1266_v57, 0.0 }
 0x206   :  { %v1283_v3 = vmax.f32 %v1261_v59, 0.0 }
 0x207   :  { %1300 = vst.msk [vmem:[%s2325_s5 + $0x78] sm:$0xff] %vm44_vm1, %v1284_v20 }
 0x208   :  { %1299 = vst.msk [vmem:[%s2325_s5 + $0x70] sm:$0xff] %vm44_vm1, %v1283_v3 }

</bundles_post_ra>
